<compile_context>
chip_gen: v7x
topology: tpu7x:2x2x1
jax: 0.10.0
libtpu: 0.0.40
codegen_flags: <defaults>
</compile_context>

<pallas_src>
import functools

import jax
import jax.numpy as jnp
from jax.experimental import pallas as pl
from jax.experimental.pallas import tpu as pltpu

BN_EPS = 1e-5  # PyTorch BatchNorm1d default


def _tdc_block_kernel(x_ref, *rest, num_layers, growth, K, L, pad):
    """Fused TDCBlock forward.

    x_ref    : (B, growth, L)               input, NCW
    rest     : per layer i: w_i (K, growth, cin_i), gamma_i (growth,1),
               beta_i (growth,1); then o_ref (B, num_layers*growth, L) and
               feat_ref scratch (B, growth*(num_layers+1), L+2*pad).
    """
    o_ref = rest[3 * num_layers]
    feat_ref = rest[3 * num_layers + 1]
    B = x_ref.shape[0]

    # Zero-init the padded VMEM-resident dense feature map once; this also
    # provides the Conv1d zero padding for every layer (in-kernel padding).
    feat_ref[...] = jnp.zeros_like(feat_ref)
    feat_ref[:, 0:growth, pad:pad + L] = x_ref[...].astype(jnp.float32)

    for i in range(num_layers):
        cin = growth * (i + 1)
        w_ref = rest[3 * i]          # (K, growth, cin)
        g_ref = rest[3 * i + 1]      # (growth, 1)
        b_ref = rest[3 * i + 2]      # (growth, 1)

        xs = feat_ref[:, 0:cin, :]                 # (B, cin, L+2*pad) dense feats
        w = w_ref[...].astype(jnp.float32)         # (K, growth, cin)

        # Conv1d as K shifted batched matmuls on the MXU (batch rides the
        # einsum batch dim — no Python batch loop, no jnp.stack relayout).
        acc = None
        for k in range(K):
            wk = jnp.broadcast_to(w[k][None], (B, growth, cin))   # (B, Cout, cin)
            tap = jnp.einsum('boc,bcl->bol', wk, xs[:, :, k:k + L],
                             preferred_element_type=jnp.float32)  # (B, Cout, L)
            acc = tap if acc is None else acc + tap

        # BatchNorm1d (training-mode biased batch statistics over (B, L)) with
        # the affine folded into a single per-channel scale, then ReLU.
        # TODO(synk): eval-mode / running-stats BatchNorm is not implemented
        # (matches a freshly-constructed module in training mode).
        inv_n = 1.0 / float(B * L)
        mean = jnp.sum(acc, axis=(0, 2), keepdims=True) * inv_n   # (1, Cout, 1)
        diff = acc - mean
        var = jnp.sum(diff * diff, axis=(0, 2), keepdims=True) * inv_n
        s = g_ref[...][None] * jax.lax.rsqrt(var + BN_EPS)        # (1, Cout, 1)
        y = jnp.maximum(diff * s + b_ref[...][None], 0.0)         # (B, Cout, L)

        # Dense connection: append this layer's output to the feature map.
        feat_ref[:, cin:cin + growth, pad:pad + L] = y

    # cat(features[1:]) == channels [growth:] of the feature map; one store.
    o_ref[...] = feat_ref[:, growth:growth * (num_layers + 1), pad:pad + L]


def tdc_block_forward(x_ncw, params, kernel_size):
    """Full TDCBlock forward.  x_ncw: (B, C, L) exactly like the PyTorch module."""
    assert kernel_size % 2 == 1, "odd kernel_size only (padding=K//2 keeps length)"
    B, C0, L = x_ncw.shape
    K = kernel_size
    pad = K // 2
    num_layers = len(params)
    growth = params[0][0].shape[0]
    assert C0 == growth, "first layer expects growth_rate input channels"
    C_total = growth * (num_layers + 1)

    # Tiny parameter prep (plain JAX): PyTorch Conv1d weight (Cout, Cin, K) ->
    # (K, Cout, Cin) so the kernel indexes tap k on a leading (non-layout) axis;
    # BN params as (Cout, 1) so channels land on the sublane axis in-kernel.
    flat_args = [x_ncw]
    for (w, gamma, beta) in params:
        flat_args.append(jnp.transpose(w, (2, 0, 1)))
        flat_args.append(gamma.reshape(-1, 1))
        flat_args.append(beta.reshape(-1, 1))

    kernel = functools.partial(_tdc_block_kernel, num_layers=num_layers,
                               growth=growth, K=K, L=L, pad=pad)
    return pl.pallas_call(
        kernel,
        out_shape=jax.ShapeDtypeStruct((B, num_layers * growth, L), jnp.float32),
        in_specs=[pl.BlockSpec(memory_space=pltpu.MemorySpace.VMEM)] * len(flat_args),
        out_specs=pl.BlockSpec(memory_space=pltpu.MemorySpace.VMEM),
        scratch_shapes=[pltpu.VMEM((B, C_total, L + 2 * pad), jnp.float32)],
    )(*flat_args)


def reference_forward(x_ncw, params, kernel_size):
    """Pure-JAX reference (lax conv + training-mode BN + ReLU) for verification."""
    pad = kernel_size // 2
    feats = [x_ncw]
    outs = []
    for (w, gamma, beta) in params:
        xin = jnp.concatenate(feats, axis=1)
        y = jax.lax.conv_general_dilated(
            xin, w, window_strides=(1,), padding=[(pad, pad)],
            dimension_numbers=("NCH", "OIH", "NCH"))
        mean = jnp.mean(y, axis=(0, 2), keepdims=True)
        var = jnp.mean((y - mean) ** 2, axis=(0, 2), keepdims=True)
        yn = (y - mean) / jnp.sqrt(var + BN_EPS)
        yn = yn * gamma[None, :, None] + beta[None, :, None]
        yn = jnp.maximum(yn, 0.0)
        feats.append(yn)
        outs.append(yn)
    return jnp.concatenate(outs, axis=1)


if __name__ == "__main__":
    num_layers = 3
    growth_rate = 4
    kernel_size = 3
    B, L = 2, 16

    key = jax.random.PRNGKey(0)
    key, kx = jax.random.split(key)
    x = jax.random.normal(kx, (B, growth_rate, L), jnp.float32)  # NCW like PyTorch

    # Deterministic parameter init (shapes from the module __init__).
    params = []
    for i in range(num_layers):
        cin = growth_rate * (i + 1)
        key, k1, k2, k3 = jax.random.split(key, 4)
        w = jax.random.normal(k1, (growth_rate, cin, kernel_size), jnp.float32)
        w = w * (1.0 / jnp.sqrt(cin * kernel_size))
        gamma = 1.0 + 0.1 * jax.random.normal(k2, (growth_rate,), jnp.float32)
        beta = 0.1 * jax.random.normal(k3, (growth_rate,), jnp.float32)
        params.append((w, gamma, beta))

    fwd = jax.jit(tdc_block_forward, static_argnums=2)
    out = jax.block_until_ready(fwd(x, params, kernel_size))
    ref = jax.block_until_ready(reference_forward(x, params, kernel_size))

    assert out.shape == (B, num_layers * growth_rate, L), out.shape
    assert jnp.allclose(out, ref, rtol=1e-4, atol=1e-4), \
        float(jnp.max(jnp.abs(out - ref)))

    print("KERNEL_OK")
</pallas_src>

<mosaic_0001>
module attributes {stable_mosaic.version = 11 : i64} {
  func.func @_tdc_block_kernel(%arg0: memref<2x4x16xf32, #tpu.memory_space<vmem>>, %arg1: memref<3x4x4xf32, #tpu.memory_space<vmem>>, %arg2: memref<4x1xf32, #tpu.memory_space<vmem>>, %arg3: memref<4x1xf32, #tpu.memory_space<vmem>>, %arg4: memref<3x4x8xf32, #tpu.memory_space<vmem>>, %arg5: memref<4x1xf32, #tpu.memory_space<vmem>>, %arg6: memref<4x1xf32, #tpu.memory_space<vmem>>, %arg7: memref<3x4x12xf32, #tpu.memory_space<vmem>>, %arg8: memref<4x1xf32, #tpu.memory_space<vmem>>, %arg9: memref<4x1xf32, #tpu.memory_space<vmem>>, %arg10: memref<2x12x16xf32, #tpu.memory_space<vmem>>, %arg11: memref<2x16x18xf32, #tpu.memory_space<vmem>>) attributes {dimension_semantics = [], scalar_prefetch = 0 : i64, scratch_operands = 1 : i64, tpu.core_type = #tpu.core_type<tc>} {
    %cst = arith.constant 0.000000e+00 : f32
    %0 = vector.broadcast %cst : f32 to vector<2x16x18xf32>
    %c0 = arith.constant 0 : index
    %c0_0 = arith.constant 0 : index
    %c0_1 = arith.constant 0 : index
    %1 = vector.load %arg11[%c0, %c0_0, %c0_1] : memref<2x16x18xf32, #tpu.memory_space<vmem>>, vector<2x16x18xf32>
    tpu.vector_store %arg11[%c0, %c0_0, %c0_1], %0 {strides = array<i32>} : memref<2x16x18xf32, #tpu.memory_space<vmem>>, vector<2x16x18xf32>,
    %c0_2 = arith.constant 0 : index
    %c0_3 = arith.constant 0 : index
    %c0_4 = arith.constant 0 : index
    %2 = vector.load %arg0[%c0_2, %c0_3, %c0_4] : memref<2x4x16xf32, #tpu.memory_space<vmem>>, vector<2x4x16xf32>
    %c0_5 = arith.constant 0 : index
    %c0_6 = arith.constant 0 : index
    %c1 = arith.constant 1 : index
    %3 = vector.load %arg11[%c0_5, %c0_6, %c1] : memref<2x16x18xf32, #tpu.memory_space<vmem>>, vector<2x4x16xf32>
    tpu.vector_store %arg11[%c0_5, %c0_6, %c1], %2 {strides = array<i32>} : memref<2x16x18xf32, #tpu.memory_space<vmem>>, vector<2x4x16xf32>,
    %c0_7 = arith.constant 0 : index
    %c0_8 = arith.constant 0 : index
    %c0_9 = arith.constant 0 : index
    %4 = vector.load %arg11[%c0_7, %c0_8, %c0_9] : memref<2x16x18xf32, #tpu.memory_space<vmem>>, vector<2x4x18xf32>
    %c0_10 = arith.constant 0 : index
    %c0_11 = arith.constant 0 : index
    %c0_12 = arith.constant 0 : index
    %5 = vector.load %arg1[%c0_10, %c0_11, %c0_12] : memref<3x4x4xf32, #tpu.memory_space<vmem>>, vector<3x4x4xf32>
    %6 = vector.extract_strided_slice %5 {offsets = [0, 0, 0], sizes = [1, 4, 4], strides = [1, 1, 1]} : vector<3x4x4xf32> to vector<1x4x4xf32>
    %7 = vector.shape_cast %6 : vector<1x4x4xf32> to vector<4x4xf32>
    %8 = vector.shape_cast %7 : vector<4x4xf32> to vector<1x4x4xf32>
    %9 = vector.shape_cast %8 : vector<1x4x4xf32> to vector<1x4x4xf32>
    %10 = vector.broadcast %9 : vector<1x4x4xf32> to vector<2x4x4xf32>
    %11 = vector.extract_strided_slice %4 {offsets = [0, 0, 0], sizes = [2, 4, 16], strides = [1, 1, 1]} : vector<2x4x18xf32> to vector<2x4x16xf32>
    "tpu.trace_start"() <{level = 10 : i32, message = "boc,bcl->bol"}> : () -> ()
    %cst_13 = arith.constant dense<0.000000e+00> : vector<2x4x16xf32>
    %12 = tpu.matmul %10, %11, %cst_13 {dimension_numbers = #tpu.dot_dimension_numbers<[2], [1], [1], [2], [0, 0, 0, 1, 1, 2], [0], [0]>} : vector<2x4x4xf32>, vector<2x4x16xf32>, vector<2x4x16xf32> -> vector<2x4x16xf32>
    "tpu.trace_stop"() : () -> ()
    %13 = vector.extract_strided_slice %5 {offsets = [1, 0, 0], sizes = [1, 4, 4], strides = [1, 1, 1]} : vector<3x4x4xf32> to vector<1x4x4xf32>
    %14 = vector.shape_cast %13 : vector<1x4x4xf32> to vector<4x4xf32>
    %15 = vector.shape_cast %14 : vector<4x4xf32> to vector<1x4x4xf32>
    %16 = vector.shape_cast %15 : vector<1x4x4xf32> to vector<1x4x4xf32>
    %17 = vector.broadcast %16 : vector<1x4x4xf32> to vector<2x4x4xf32>
    %18 = vector.extract_strided_slice %4 {offsets = [0, 0, 1], sizes = [2, 4, 16], strides = [1, 1, 1]} : vector<2x4x18xf32> to vector<2x4x16xf32>
    "tpu.trace_start"() <{level = 10 : i32, message = "boc,bcl->bol"}> : () -> ()
    %cst_14 = arith.constant dense<0.000000e+00> : vector<2x4x16xf32>
    %19 = tpu.matmul %17, %18, %cst_14 {dimension_numbers = #tpu.dot_dimension_numbers<[2], [1], [1], [2], [0, 0, 0, 1, 1, 2], [0], [0]>} : vector<2x4x4xf32>, vector<2x4x16xf32>, vector<2x4x16xf32> -> vector<2x4x16xf32>
    "tpu.trace_stop"() : () -> ()
    %20 = arith.addf %12, %19 : vector<2x4x16xf32>
    %21 = vector.extract_strided_slice %5 {offsets = [2, 0, 0], sizes = [1, 4, 4], strides = [1, 1, 1]} : vector<3x4x4xf32> to vector<1x4x4xf32>
    %22 = vector.shape_cast %21 : vector<1x4x4xf32> to vector<4x4xf32>
    %23 = vector.shape_cast %22 : vector<4x4xf32> to vector<1x4x4xf32>
    %24 = vector.shape_cast %23 : vector<1x4x4xf32> to vector<1x4x4xf32>
    %25 = vector.broadcast %24 : vector<1x4x4xf32> to vector<2x4x4xf32>
    %26 = vector.extract_strided_slice %4 {offsets = [0, 0, 2], sizes = [2, 4, 16], strides = [1, 1, 1]} : vector<2x4x18xf32> to vector<2x4x16xf32>
    "tpu.trace_start"() <{level = 10 : i32, message = "boc,bcl->bol"}> : () -> ()
    %cst_15 = arith.constant dense<0.000000e+00> : vector<2x4x16xf32>
    %27 = tpu.matmul %25, %26, %cst_15 {dimension_numbers = #tpu.dot_dimension_numbers<[2], [1], [1], [2], [0, 0, 0, 1, 1, 2], [0], [0]>} : vector<2x4x4xf32>, vector<2x4x16xf32>, vector<2x4x16xf32> -> vector<2x4x16xf32>
    "tpu.trace_stop"() : () -> ()
    %28 = arith.addf %20, %27 : vector<2x4x16xf32>
    %cst_16 = arith.constant dense<0.000000e+00> : vector<4xf32>
    %29 = vector.multi_reduction <add>, %28, %cst_16 [0, 2] : vector<2x4x16xf32> to vector<4xf32>
    %30 = vector.shape_cast %29 : vector<4xf32> to vector<1x4x1xf32>
    %cst_17 = arith.constant 3.125000e-02 : f32
    %31 = vector.broadcast %cst_17 : f32 to vector<1x4x1xf32>
    %32 = arith.mulf %30, %31 : vector<1x4x1xf32>
    %33 = vector.broadcast %32 : vector<1x4x1xf32> to vector<2x4x16xf32>
    %34 = arith.subf %28, %33 : vector<2x4x16xf32>
    %35 = arith.mulf %34, %34 : vector<2x4x16xf32>
    %cst_18 = arith.constant dense<0.000000e+00> : vector<4xf32>
    %36 = vector.multi_reduction <add>, %35, %cst_18 [0, 2] : vector<2x4x16xf32> to vector<4xf32>
    %37 = vector.shape_cast %36 : vector<4xf32> to vector<1x4x1xf32>
    %cst_19 = arith.constant 3.125000e-02 : f32
    %38 = vector.broadcast %cst_19 : f32 to vector<1x4x1xf32>
    %39 = arith.mulf %37, %38 : vector<1x4x1xf32>
    %c0_20 = arith.constant 0 : index
    %c0_21 = arith.constant 0 : index
    %40 = vector.load %arg2[%c0_20, %c0_21] : memref<4x1xf32, #tpu.memory_space<vmem>>, vector<4x1xf32>
    %41 = vector.shape_cast %40 : vector<4x1xf32> to vector<1x4x1xf32>
    %cst_22 = arith.constant 9.99999974E-6 : f32
    %42 = vector.broadcast %cst_22 : f32 to vector<1x4x1xf32>
    %43 = arith.addf %39, %42 : vector<1x4x1xf32>
    %44 = math.rsqrt %43 : vector<1x4x1xf32>
    %45 = arith.mulf %41, %44 : vector<1x4x1xf32>
    %46 = vector.broadcast %45 : vector<1x4x1xf32> to vector<2x4x16xf32>
    %47 = arith.mulf %34, %46 : vector<2x4x16xf32>
    %c0_23 = arith.constant 0 : index
    %c0_24 = arith.constant 0 : index
    %48 = vector.load %arg3[%c0_23, %c0_24] : memref<4x1xf32, #tpu.memory_space<vmem>>, vector<4x1xf32>
    %49 = vector.shape_cast %48 : vector<4x1xf32> to vector<1x4x1xf32>
    %50 = vector.broadcast %49 : vector<1x4x1xf32> to vector<2x4x16xf32>
    %51 = arith.addf %47, %50 : vector<2x4x16xf32>
    %cst_25 = arith.constant 0.000000e+00 : f32
    %52 = vector.broadcast %cst_25 : f32 to vector<2x4x16xf32>
    %53 = arith.maximumf %51, %52 : vector<2x4x16xf32>
    %c0_26 = arith.constant 0 : index
    %c4 = arith.constant 4 : index
    %c1_27 = arith.constant 1 : index
    %54 = vector.load %arg11[%c0_26, %c4, %c1_27] : memref<2x16x18xf32, #tpu.memory_space<vmem>>, vector<2x4x16xf32>
    tpu.vector_store %arg11[%c0_26, %c4, %c1_27], %53 {strides = array<i32>} : memref<2x16x18xf32, #tpu.memory_space<vmem>>, vector<2x4x16xf32>,
    %c0_28 = arith.constant 0 : index
    %c0_29 = arith.constant 0 : index
    %c0_30 = arith.constant 0 : index
    %55 = vector.load %arg11[%c0_28, %c0_29, %c0_30] : memref<2x16x18xf32, #tpu.memory_space<vmem>>, vector<2x8x18xf32>
    %c0_31 = arith.constant 0 : index
    %c0_32 = arith.constant 0 : index
    %c0_33 = arith.constant 0 : index
    %56 = vector.load %arg4[%c0_31, %c0_32, %c0_33] : memref<3x4x8xf32, #tpu.memory_space<vmem>>, vector<3x4x8xf32>
    %57 = vector.extract_strided_slice %56 {offsets = [0, 0, 0], sizes = [1, 4, 8], strides = [1, 1, 1]} : vector<3x4x8xf32> to vector<1x4x8xf32>
    %58 = vector.shape_cast %57 : vector<1x4x8xf32> to vector<4x8xf32>
    %59 = vector.shape_cast %58 : vector<4x8xf32> to vector<1x4x8xf32>
    %60 = vector.shape_cast %59 : vector<1x4x8xf32> to vector<1x4x8xf32>
    %61 = vector.broadcast %60 : vector<1x4x8xf32> to vector<2x4x8xf32>
    %62 = vector.extract_strided_slice %55 {offsets = [0, 0, 0], sizes = [2, 8, 16], strides = [1, 1, 1]} : vector<2x8x18xf32> to vector<2x8x16xf32>
    "tpu.trace_start"() <{level = 10 : i32, message = "boc,bcl->bol"}> : () -> ()
    %cst_34 = arith.constant dense<0.000000e+00> : vector<2x4x16xf32>
    %63 = tpu.matmul %61, %62, %cst_34 {dimension_numbers = #tpu.dot_dimension_numbers<[2], [1], [1], [2], [0, 0, 0, 1, 1, 2], [0], [0]>} : vector<2x4x8xf32>, vector<2x8x16xf32>, vector<2x4x16xf32> -> vector<2x4x16xf32>
    "tpu.trace_stop"() : () -> ()
    %64 = vector.extract_strided_slice %56 {offsets = [1, 0, 0], sizes = [1, 4, 8], strides = [1, 1, 1]} : vector<3x4x8xf32> to vector<1x4x8xf32>
    %65 = vector.shape_cast %64 : vector<1x4x8xf32> to vector<4x8xf32>
    %66 = vector.shape_cast %65 : vector<4x8xf32> to vector<1x4x8xf32>
    %67 = vector.shape_cast %66 : vector<1x4x8xf32> to vector<1x4x8xf32>
    %68 = vector.broadcast %67 : vector<1x4x8xf32> to vector<2x4x8xf32>
    %69 = vector.extract_strided_slice %55 {offsets = [0, 0, 1], sizes = [2, 8, 16], strides = [1, 1, 1]} : vector<2x8x18xf32> to vector<2x8x16xf32>
    "tpu.trace_start"() <{level = 10 : i32, message = "boc,bcl->bol"}> : () -> ()
    %cst_35 = arith.constant dense<0.000000e+00> : vector<2x4x16xf32>
    %70 = tpu.matmul %68, %69, %cst_35 {dimension_numbers = #tpu.dot_dimension_numbers<[2], [1], [1], [2], [0, 0, 0, 1, 1, 2], [0], [0]>} : vector<2x4x8xf32>, vector<2x8x16xf32>, vector<2x4x16xf32> -> vector<2x4x16xf32>
    "tpu.trace_stop"() : () -> ()
    %71 = arith.addf %63, %70 : vector<2x4x16xf32>
    %72 = vector.extract_strided_slice %56 {offsets = [2, 0, 0], sizes = [1, 4, 8], strides = [1, 1, 1]} : vector<3x4x8xf32> to vector<1x4x8xf32>
    %73 = vector.shape_cast %72 : vector<1x4x8xf32> to vector<4x8xf32>
    %74 = vector.shape_cast %73 : vector<4x8xf32> to vector<1x4x8xf32>
    %75 = vector.shape_cast %74 : vector<1x4x8xf32> to vector<1x4x8xf32>
    %76 = vector.broadcast %75 : vector<1x4x8xf32> to vector<2x4x8xf32>
    %77 = vector.extract_strided_slice %55 {offsets = [0, 0, 2], sizes = [2, 8, 16], strides = [1, 1, 1]} : vector<2x8x18xf32> to vector<2x8x16xf32>
    "tpu.trace_start"() <{level = 10 : i32, message = "boc,bcl->bol"}> : () -> ()
    %cst_36 = arith.constant dense<0.000000e+00> : vector<2x4x16xf32>
    %78 = tpu.matmul %76, %77, %cst_36 {dimension_numbers = #tpu.dot_dimension_numbers<[2], [1], [1], [2], [0, 0, 0, 1, 1, 2], [0], [0]>} : vector<2x4x8xf32>, vector<2x8x16xf32>, vector<2x4x16xf32> -> vector<2x4x16xf32>
    "tpu.trace_stop"() : () -> ()
    %79 = arith.addf %71, %78 : vector<2x4x16xf32>
    %cst_37 = arith.constant dense<0.000000e+00> : vector<4xf32>
    %80 = vector.multi_reduction <add>, %79, %cst_37 [0, 2] : vector<2x4x16xf32> to vector<4xf32>
    %81 = vector.shape_cast %80 : vector<4xf32> to vector<1x4x1xf32>
    %cst_38 = arith.constant 3.125000e-02 : f32
    %82 = vector.broadcast %cst_38 : f32 to vector<1x4x1xf32>
    %83 = arith.mulf %81, %82 : vector<1x4x1xf32>
    %84 = vector.broadcast %83 : vector<1x4x1xf32> to vector<2x4x16xf32>
    %85 = arith.subf %79, %84 : vector<2x4x16xf32>
    %86 = arith.mulf %85, %85 : vector<2x4x16xf32>
    %cst_39 = arith.constant dense<0.000000e+00> : vector<4xf32>
    %87 = vector.multi_reduction <add>, %86, %cst_39 [0, 2] : vector<2x4x16xf32> to vector<4xf32>
    %88 = vector.shape_cast %87 : vector<4xf32> to vector<1x4x1xf32>
    %cst_40 = arith.constant 3.125000e-02 : f32
    %89 = vector.broadcast %cst_40 : f32 to vector<1x4x1xf32>
    %90 = arith.mulf %88, %89 : vector<1x4x1xf32>
    %c0_41 = arith.constant 0 : index
    %c0_42 = arith.constant 0 : index
    %91 = vector.load %arg5[%c0_41, %c0_42] : memref<4x1xf32, #tpu.memory_space<vmem>>, vector<4x1xf32>
    %92 = vector.shape_cast %91 : vector<4x1xf32> to vector<1x4x1xf32>
    %cst_43 = arith.constant 9.99999974E-6 : f32
    %93 = vector.broadcast %cst_43 : f32 to vector<1x4x1xf32>
    %94 = arith.addf %90, %93 : vector<1x4x1xf32>
    %95 = math.rsqrt %94 : vector<1x4x1xf32>
    %96 = arith.mulf %92, %95 : vector<1x4x1xf32>
    %97 = vector.broadcast %96 : vector<1x4x1xf32> to vector<2x4x16xf32>
    %98 = arith.mulf %85, %97 : vector<2x4x16xf32>
    %c0_44 = arith.constant 0 : index
    %c0_45 = arith.constant 0 : index
    %99 = vector.load %arg6[%c0_44, %c0_45] : memref<4x1xf32, #tpu.memory_space<vmem>>, vector<4x1xf32>
    %100 = vector.shape_cast %99 : vector<4x1xf32> to vector<1x4x1xf32>
    %101 = vector.broadcast %100 : vector<1x4x1xf32> to vector<2x4x16xf32>
    %102 = arith.addf %98, %101 : vector<2x4x16xf32>
    %cst_46 = arith.constant 0.000000e+00 : f32
    %103 = vector.broadcast %cst_46 : f32 to vector<2x4x16xf32>
    %104 = arith.maximumf %102, %103 : vector<2x4x16xf32>
    %c0_47 = arith.constant 0 : index
    %c8 = arith.constant 8 : index
    %c1_48 = arith.constant 1 : index
    %105 = vector.load %arg11[%c0_47, %c8, %c1_48] : memref<2x16x18xf32, #tpu.memory_space<vmem>>, vector<2x4x16xf32>
    tpu.vector_store %arg11[%c0_47, %c8, %c1_48], %104 {strides = array<i32>} : memref<2x16x18xf32, #tpu.memory_space<vmem>>, vector<2x4x16xf32>,
    %c0_49 = arith.constant 0 : index
    %c0_50 = arith.constant 0 : index
    %c0_51 = arith.constant 0 : index
    %106 = vector.load %arg11[%c0_49, %c0_50, %c0_51] : memref<2x16x18xf32, #tpu.memory_space<vmem>>, vector<2x12x18xf32>
    %c0_52 = arith.constant 0 : index
    %c0_53 = arith.constant 0 : index
    %c0_54 = arith.constant 0 : index
    %107 = vector.load %arg7[%c0_52, %c0_53, %c0_54] : memref<3x4x12xf32, #tpu.memory_space<vmem>>, vector<3x4x12xf32>
    %108 = vector.extract_strided_slice %107 {offsets = [0, 0, 0], sizes = [1, 4, 12], strides = [1, 1, 1]} : vector<3x4x12xf32> to vector<1x4x12xf32>
    %109 = vector.shape_cast %108 : vector<1x4x12xf32> to vector<4x12xf32>
    %110 = vector.shape_cast %109 : vector<4x12xf32> to vector<1x4x12xf32>
    %111 = vector.shape_cast %110 : vector<1x4x12xf32> to vector<1x4x12xf32>
    %112 = vector.broadcast %111 : vector<1x4x12xf32> to vector<2x4x12xf32>
    %113 = vector.extract_strided_slice %106 {offsets = [0, 0, 0], sizes = [2, 12, 16], strides = [1, 1, 1]} : vector<2x12x18xf32> to vector<2x12x16xf32>
    "tpu.trace_start"() <{level = 10 : i32, message = "boc,bcl->bol"}> : () -> ()
    %cst_55 = arith.constant dense<0.000000e+00> : vector<2x4x16xf32>
    %114 = tpu.matmul %112, %113, %cst_55 {dimension_numbers = #tpu.dot_dimension_numbers<[2], [1], [1], [2], [0, 0, 0, 1, 1, 2], [0], [0]>} : vector<2x4x12xf32>, vector<2x12x16xf32>, vector<2x4x16xf32> -> vector<2x4x16xf32>
    "tpu.trace_stop"() : () -> ()
    %115 = vector.extract_strided_slice %107 {offsets = [1, 0, 0], sizes = [1, 4, 12], strides = [1, 1, 1]} : vector<3x4x12xf32> to vector<1x4x12xf32>
    %116 = vector.shape_cast %115 : vector<1x4x12xf32> to vector<4x12xf32>
    %117 = vector.shape_cast %116 : vector<4x12xf32> to vector<1x4x12xf32>
    %118 = vector.shape_cast %117 : vector<1x4x12xf32> to vector<1x4x12xf32>
    %119 = vector.broadcast %118 : vector<1x4x12xf32> to vector<2x4x12xf32>
    %120 = vector.extract_strided_slice %106 {offsets = [0, 0, 1], sizes = [2, 12, 16], strides = [1, 1, 1]} : vector<2x12x18xf32> to vector<2x12x16xf32>
    "tpu.trace_start"() <{level = 10 : i32, message = "boc,bcl->bol"}> : () -> ()
    %cst_56 = arith.constant dense<0.000000e+00> : vector<2x4x16xf32>
    %121 = tpu.matmul %119, %120, %cst_56 {dimension_numbers = #tpu.dot_dimension_numbers<[2], [1], [1], [2], [0, 0, 0, 1, 1, 2], [0], [0]>} : vector<2x4x12xf32>, vector<2x12x16xf32>, vector<2x4x16xf32> -> vector<2x4x16xf32>
    "tpu.trace_stop"() : () -> ()
    %122 = arith.addf %114, %121 : vector<2x4x16xf32>
    %123 = vector.extract_strided_slice %107 {offsets = [2, 0, 0], sizes = [1, 4, 12], strides = [1, 1, 1]} : vector<3x4x12xf32> to vector<1x4x12xf32>
    %124 = vector.shape_cast %123 : vector<1x4x12xf32> to vector<4x12xf32>
    %125 = vector.shape_cast %124 : vector<4x12xf32> to vector<1x4x12xf32>
    %126 = vector.shape_cast %125 : vector<1x4x12xf32> to vector<1x4x12xf32>
    %127 = vector.broadcast %126 : vector<1x4x12xf32> to vector<2x4x12xf32>
    %128 = vector.extract_strided_slice %106 {offsets = [0, 0, 2], sizes = [2, 12, 16], strides = [1, 1, 1]} : vector<2x12x18xf32> to vector<2x12x16xf32>
    "tpu.trace_start"() <{level = 10 : i32, message = "boc,bcl->bol"}> : () -> ()
    %cst_57 = arith.constant dense<0.000000e+00> : vector<2x4x16xf32>
    %129 = tpu.matmul %127, %128, %cst_57 {dimension_numbers = #tpu.dot_dimension_numbers<[2], [1], [1], [2], [0, 0, 0, 1, 1, 2], [0], [0]>} : vector<2x4x12xf32>, vector<2x12x16xf32>, vector<2x4x16xf32> -> vector<2x4x16xf32>
    "tpu.trace_stop"() : () -> ()
    %130 = arith.addf %122, %129 : vector<2x4x16xf32>
    %cst_58 = arith.constant dense<0.000000e+00> : vector<4xf32>
    %131 = vector.multi_reduction <add>, %130, %cst_58 [0, 2] : vector<2x4x16xf32> to vector<4xf32>
    %132 = vector.shape_cast %131 : vector<4xf32> to vector<1x4x1xf32>
    %cst_59 = arith.constant 3.125000e-02 : f32
    %133 = vector.broadcast %cst_59 : f32 to vector<1x4x1xf32>
    %134 = arith.mulf %132, %133 : vector<1x4x1xf32>
    %135 = vector.broadcast %134 : vector<1x4x1xf32> to vector<2x4x16xf32>
    %136 = arith.subf %130, %135 : vector<2x4x16xf32>
    %137 = arith.mulf %136, %136 : vector<2x4x16xf32>
    %cst_60 = arith.constant dense<0.000000e+00> : vector<4xf32>
    %138 = vector.multi_reduction <add>, %137, %cst_60 [0, 2] : vector<2x4x16xf32> to vector<4xf32>
    %139 = vector.shape_cast %138 : vector<4xf32> to vector<1x4x1xf32>
    %cst_61 = arith.constant 3.125000e-02 : f32
    %140 = vector.broadcast %cst_61 : f32 to vector<1x4x1xf32>
    %141 = arith.mulf %139, %140 : vector<1x4x1xf32>
    %c0_62 = arith.constant 0 : index
    %c0_63 = arith.constant 0 : index
    %142 = vector.load %arg8[%c0_62, %c0_63] : memref<4x1xf32, #tpu.memory_space<vmem>>, vector<4x1xf32>
    %143 = vector.shape_cast %142 : vector<4x1xf32> to vector<1x4x1xf32>
    %cst_64 = arith.constant 9.99999974E-6 : f32
    %144 = vector.broadcast %cst_64 : f32 to vector<1x4x1xf32>
    %145 = arith.addf %141, %144 : vector<1x4x1xf32>
    %146 = math.rsqrt %145 : vector<1x4x1xf32>
    %147 = arith.mulf %143, %146 : vector<1x4x1xf32>
    %148 = vector.broadcast %147 : vector<1x4x1xf32> to vector<2x4x16xf32>
    %149 = arith.mulf %136, %148 : vector<2x4x16xf32>
    %c0_65 = arith.constant 0 : index
    %c0_66 = arith.constant 0 : index
    %150 = vector.load %arg9[%c0_65, %c0_66] : memref<4x1xf32, #tpu.memory_space<vmem>>, vector<4x1xf32>
    %151 = vector.shape_cast %150 : vector<4x1xf32> to vector<1x4x1xf32>
    %152 = vector.broadcast %151 : vector<1x4x1xf32> to vector<2x4x16xf32>
    %153 = arith.addf %149, %152 : vector<2x4x16xf32>
    %cst_67 = arith.constant 0.000000e+00 : f32
    %154 = vector.broadcast %cst_67 : f32 to vector<2x4x16xf32>
    %155 = arith.maximumf %153, %154 : vector<2x4x16xf32>
    %c0_68 = arith.constant 0 : index
    %c12 = arith.constant 12 : index
    %c1_69 = arith.constant 1 : index
    %156 = vector.load %arg11[%c0_68, %c12, %c1_69] : memref<2x16x18xf32, #tpu.memory_space<vmem>>, vector<2x4x16xf32>
    tpu.vector_store %arg11[%c0_68, %c12, %c1_69], %155 {strides = array<i32>} : memref<2x16x18xf32, #tpu.memory_space<vmem>>, vector<2x4x16xf32>,
    %c0_70 = arith.constant 0 : index
    %c4_71 = arith.constant 4 : index
    %c1_72 = arith.constant 1 : index
    %157 = vector.load %arg11[%c0_70, %c4_71, %c1_72] : memref<2x16x18xf32, #tpu.memory_space<vmem>>, vector<2x12x16xf32>
    %c0_73 = arith.constant 0 : index
    %c0_74 = arith.constant 0 : index
    %c0_75 = arith.constant 0 : index
    %158 = vector.load %arg10[%c0_73, %c0_74, %c0_75] : memref<2x12x16xf32, #tpu.memory_space<vmem>>, vector<2x12x16xf32>
    tpu.vector_store %arg10[%c0_73, %c0_74, %c0_75], %157 {strides = array<i32>} : memref<2x12x16xf32, #tpu.memory_space<vmem>>, vector<2x12x16xf32>,
    return
  }
}

</mosaic_0001>

<bundles_post_ra>
// kernel: tdc_block_forward.1
= control target key start
LH: loop header
LB: loop body
LE: loop exit
PB: predicated region body
PF: predicated region fallthrough
CT: control target
= control target key end

     0   :  { %vm35_vm0 = vcmask 146432   ;;  %v1868_v1 = vmov 0.0   ;;  %s1869_s15 = smov 1   ;;  %vm1870_vm1 = vmmov 0   ;;  %vm50_vm2 = vcmask 134152   ;;  %s1871_s18 = smov 126   ;;  %s2147_s0 = inlined_call_operand.vmem [shape: f32[2,4,16], index: 0, kind: input, shape index: {}]   ;;  %s2148_s1 = inlined_call_operand.vmem [shape: f32[3,4,4], index: 1, kind: input, shape index: {}]   ;;  %s2149_s3 = inlined_call_operand.vmem [shape: f32[4,1], index: 3, kind: input, shape index: {}]   ;;  %s2150_s2 = inlined_call_operand.vmem [shape: f32[4,1], index: 2, kind: input, shape index: {}]   ;;  %s2151_s4 = inlined_call_operand.vmem [shape: f32[3,4,8], index: 4, kind: input, shape index: {}]   ;;  %s2152_s6 = inlined_call_operand.vmem [shape: f32[4,1], index: 6, kind: input, shape index: {}]   ;;  %s2153_s5 = inlined_call_operand.vmem [shape: f32[4,1], index: 5, kind: input, shape index: {}]   ;;  %s2154_s7 = inlined_call_operand.vmem [shape: f32[3,4,12], index: 7, kind: input, shape index: {}]   ;;  %s2155_s9 = inlined_call_operand.vmem [shape: f32[4,1], index: 9, kind: input, shape index: {}]   ;;  %s2156_s8 = inlined_call_operand.vmem [shape: f32[4,1], index: 8, kind: input, shape index: {}]   ;;  %s2157_s10 = inlined_call_operand.vmem [shape: f32[2,12,16], index: 10, kind: output, shape index: {}]  }
   0x1   :  { %v40_v0 = vld [vmem:[%s2147_s0] sm:$0xf]  ;;  %36 = vst.msk [vmem:[#allocation2] sm:$0xff] %vm35_vm0, %v1868_v1  ;;  %37 = vst.msk [vmem:[#allocation2 + $0x8] sm:$0xff] %vm35_vm0, %v1868_v1  ;;  %1682 = vmatprep.subr.mxu0 %v1868_v1  ;;  %1687 = vmatprep.subr.mxu1 %v1868_v1  ;;  %v41_v2 = vld [vmem:[%s2147_s0 + $0x4] sm:$0xf] }
   0x2   :  { %38 = vst.msk [vmem:[#allocation2 + $0x10] sm:$0xff] %vm35_vm0, %v1868_v1  ;;  %39 = vst.msk [vmem:[#allocation2 + $0x18] sm:$0xff] %vm35_vm0, %v1868_v1  ;;  %44 = vrot.lane.b32.xlu0 %v40_v0, %s1869_s15  ;;  %1684 = vmatprep.mubr.msk.f32.mxu0 %vm1870_vm1, %v1868_v1  ;;  %s1872_s0 = smov 127   ;;  %vm65_vm3 = vcmask 1043456   ;;  %v56_v7 = vld [vmem:[%s2148_s1 + $0x4] sm:$0xf] }
   0x3   :  { %1689 = vmatprep.mubr.msk.f32.mxu1 %vm1870_vm1, %v1868_v1  ;;  %vm61_vm4 = vcmask 31744   ;;  %v55_v10 = vld [vmem:[%s2148_s1] sm:$0xf]  ;;  %v57_v13 = vld [vmem:[%s2148_s1 + $0x8] sm:$0xf]  ;;  %vm513_vm5 = vcmask 125952  }
   0x4   :  { %v1873_v30 = vmov 0   ;;  %v541_v31 = vld [vmem:[%s2149_s3] sm:$0xf]  ;;  %v564_v50 = vld [vmem:[%s2151_s4 + $0x4] sm:$0xf]  ;;  %vm570_vm6 = vcmask 64512  }
   0x5   :  { %1840 = vset.pattern.permute.xlu0 %v1873_v30  ;;  %1841 = vset.pattern.permute.xlu1 %v1873_v30  ;;  %v530_v35 = vld [vmem:[%s2150_s2] sm:$0xf]  ;;  %v565_v56 = vld [vmem:[%s2151_s4 + $0x8] sm:$0xf]  ;;  %vm1875_vm7 = vmmov 1   ;;  %vm1073_vm9 = vcmask 97280  }
   0x6   :  { %46 = vrot.lane.b32.xlu0 %v41_v2, %s1869_s15  ;;  %v563_v53 = vld [vmem:[%s2151_s4] sm:$0xf]  ;;  %vm2074_vm8 = vmpackc.low %vm65_vm3, %vm1875_vm7  ;;  %vm1601_vm10 = vcmask 130048  }
  0x74   :  { %v45_v3 = vpop.permute.xlu0 %44 }
  0x75   :  { %51 = vst.msk [vmem:[#allocation2] sm:$0xf] %vm50_vm2, %v45_v3 }
  0x78   :  { %v47_v4 = vpop.permute.xlu0 %46 }
  0x79   :  { %52 = vst.msk [vmem:[#allocation2 + $0x10] sm:$0xf] %vm50_vm2, %v47_v4 }
  0x7c   :  { %v53_v5 = vld [vmem:[#allocation2] sm:$0xf] }
  0x7d   :  { %360 = vrot.lane.b32.xlu0 %v53_v5, %s1871_s18  ;;  %59 = vrot.lane.b32.xlu1 %v53_v5, %s1872_s0 }
  0x80   :  { %v54_v6 = vld [vmem:[#allocation2 + $0x10] sm:$0xf] }
  0x81   :  { %139 = vrot.lane.b32.xlu1 %v54_v6, %s1872_s0 }
  0x85   :  { %437 = vrot.lane.b32.xlu1 %v54_v6, %s1871_s18 }
  0xef   :  { %v60_v8 = vpop.permute.xlu1 %59  ;;  %v361_v11 = vpop.permute.xlu0 %360 }
  0xf0   :  { %1683 = vmatpush3.msk.msra.mxu0 %vm65_vm3, %v60_v8 }
  0xf1   :  { %1685 = vmatmul.mubr.msk.f32.vlgmr.msra.gmra.mrb[0].mxu0 %vm61_vm4, %v56_v7  ;;  %1692 = vmatprep.subr.mxu0 %v1868_v1 }
  0xf2   :  { %1693 = vmatpush3.msk.msra.mxu0 %vm65_vm3, %v53_v5  ;;  %1694 = vmatprep.mubr.msk.f32.mxu0 %vm1870_vm1, %v1868_v1 }
  0xf3   :  { %v140_v9 = vpop.permute.xlu1 %139  ;;  %1702 = vmatprep.subr.mxu0 %v1868_v1 }
  0xf4   :  { %1688 = vmatpush3.msk.msra.mxu1 %vm65_vm3, %v140_v9 }
  0xf5   :  { %1690 = vmatmul.mubr.msk.f32.vlgmr.msra.gmra.mrb[0].mxu1 %vm61_vm4, %v56_v7  ;;  %1697 = vmatprep.subr.mxu1 %v1868_v1 }
  0xf6   :  { %1698 = vmatpush3.msk.msra.mxu1 %vm65_vm3, %v54_v6  ;;  %1699 = vmatprep.mubr.msk.f32.mxu1 %vm1870_vm1, %v1868_v1 }
  0xf7   :  { %1707 = vmatprep.subr.mxu1 %v1868_v1  ;;  %v438_v12 = vpop.permute.xlu1 %437 }
  0xf9   :  { %1695 = vmatmul.mubr.msk.f32.vlgmr.msra.gmra.mrb[0].mxu0 %vm61_vm4, %v55_v10 }
  0xfa   :  { %1703 = vmatpush3.msk.msra.mxu0 %vm65_vm3, %v361_v11  ;;  %1704 = vmatprep.mubr.msk.f32.mxu0 %vm1870_vm1, %v1868_v1 }
  0xfb   :  { %1712 = vmatprep.subr.mxu0 %v1868_v1 }
  0xfd   :  { %1700 = vmatmul.mubr.msk.f32.vlgmr.msra.gmra.mrb[0].mxu1 %vm61_vm4, %v55_v10  ;;  %v1039_v10 = vld [vmem:[%s2152_s6] sm:$0xf] }
  0xfe   :  { %1708 = vmatpush3.msk.msra.mxu1 %vm65_vm3, %v438_v12  ;;  %1709 = vmatprep.mubr.msk.f32.mxu1 %vm1870_vm1, %v1868_v1 }
  0xff   :  { %1717 = vmatprep.subr.mxu1 %v1868_v1 }
 0x101   :  { %1705 = vmatmul.mubr.msk.f32.vlgmr.msra.gmra.mrb[0].mxu0 %vm61_vm4, %v57_v13 }
 0x102   :  { %1714 = vmatprep.mubr.msk.f32.mxu0 %vm1870_vm1, %v1868_v1 }
 0x105   :  { %1710 = vmatmul.mubr.msk.f32.vlgmr.msra.gmra.mrb[0].mxu1 %vm61_vm4, %v57_v13 }
 0x106   :  { %1719 = vmatprep.mubr.msk.f32.mxu1 %vm1870_vm1, %v1868_v1 }
 0x1d4   :  { %v433_v14 = vpop.f32.mrb[0].mxu0 }
 0x1d5   :  { %v1706_v15 = vpop.f32.mrb[1].mxu0  ;;  %v514_v17 = vsel %vm513_vm5, %v433_v14, 0.0 }
 0x1d8   :  { %v507_v16 = vpop.f32.mrb[0].mxu1 }
 0x1d9   :  { %v515_v18 = vsel %vm513_vm5, %v507_v16, 0.0  ;;  %v1711_v19 = vpop.f32.mrb[1].mxu1 }
 0x1da   :  { %v516_v20 = vadd.f32 %v515_v18, %v514_v17 }
 0x1dc   :  { %517 = vadd.xlane.f32.xlu0 %v516_v20 }
 0x269   :  { %v518_v21 = vpop.xlane.xlu0 %517 }
 0x26a   :  { %v519_v22 = vmul.f32 0.03125, %v518_v21 }
 0x26c   :  { %v520_v23 = vsub.f32 %v433_v14, %v519_v22  ;;  %v521_v24 = vsub.f32 %v507_v16, %v519_v22  ;;  %v1028_v14 = vld [vmem:[%s2153_s5] sm:$0xf] }
 0x26e   :  { %v522_v25 = vmul.f32 %v520_v23, %v520_v23  ;;  %v523_v26 = vmul.f32 %v521_v24, %v521_v24 }
 0x270   :  { %v524_v27 = vsel %vm513_vm5, %v522_v25, 0.0  ;;  %v525_v28 = vsel %vm513_vm5, %v523_v26, 0.0 }
 0x271   :  { %v526_v29 = vadd.f32 %v525_v28, %v524_v27  ;;  %v1874_v27 = vmov 0.0|0.0  }
 0x273   :  { %527 = vadd.xlane.f32.xlu1 %v526_v29 }
 0x284   :  { %544 = vperm.xlu1 %1841, %v541_v31  }
 0x300   :  { %v528_v32 = vpop.xlane.xlu1 %527 }
 0x301   :  { %v529_v33 = vmul.f32 0.03125, %v528_v32 }
 0x303   :  { %v531_v34 = vadd.f32 1e-05, %v529_v33 }
 0x304   :  { %v545_v39 = vpop.permute.xlu1 %544 }
 0x305   :  { %1862 = vrsqrt.f32 %v531_v34 }
 0x30f   :  { %v1863_v36 = vpop.eup %1862 }
 0x310   :  { %v533_v37 = vmul.f32 %v1863_v36, %v530_v35 }
 0x312   :  { %536 = vperm.xlu0 %1840, %v533_v37  }
 0x391   :  { %v537_v38 = vpop.permute.xlu0 %536 }
 0x392   :  { %v539_v40 = vmul.f32 %v537_v38, %v520_v23  ;;  %v540_v41 = vmul.f32 %v537_v38, %v521_v24 }
 0x394   :  { %v547_v42 = vadd.f32 %v545_v39, %v539_v40  ;;  %v548_v43 = vadd.f32 %v545_v39, %v540_v41  ;;  %v1064_v41 = vld [vmem:[%s2154_s7 + $0x4] sm:$0xf] }
 0x396   :  { %v549_v44 = vmax.f32 %v547_v42, 0.0  ;;  %v550_v45 = vmax.f32 %v548_v43, 0.0 }
 0x398   :  { %553 = vrot.lane.b32.xlu1 %v549_v44, %s1869_s15 }
 0x39c   :  { %555 = vrot.lane.b32.xlu1 %v550_v45, %s1869_s15 }
 0x40a   :  { %v554_v46 = vpop.permute.xlu1 %553 }
 0x40b   :  { %559 = vst.msk [vmem:[#allocation2 + $0x4] sm:$0xf] %vm50_vm2, %v554_v46 }
 0x40e   :  { %v556_v47 = vpop.permute.xlu1 %555 }
 0x40f   :  { %560 = vst.msk [vmem:[#allocation2 + $0x14] sm:$0xf] %vm50_vm2, %v556_v47 }
 0x412   :  { %v2008_v48 = vld [vmem:[#allocation2] sm:$0xff] }
 0x413   :  { %567 = vrot.lane.b32.xlu1 %v2008_v48, %s1872_s0 }
 0x416   :  { %v2012_v49 = vld [vmem:[#allocation2 + $0x10] sm:$0xff] }
 0x417   :  { %645 = vrot.lane.b32.xlu1 %v2012_v49, %s1872_s0 }
 0x41b   :  { %861 = vrot.lane.b32.xlu1 %v2008_v48, %s1871_s18 }
 0x41f   :  { %937 = vrot.lane.b32.xlu1 %v2012_v49, %s1871_s18 }
 0x485   :  { %v568_v51 = vpop.permute.xlu1 %567 }
 0x486   :  { %1713 = vmatpush3.msra.mxu0 %v568_v51 }
 0x487   :  { %1715 = vmatmul.mubr.msk.f32.vlgmr.msra.gmra.mrb[2].mxu0 %vm570_vm6, %v564_v50  ;;  %1722 = vmatprep.subr.mxu0 %v1868_v1 }
 0x488   :  { %1723 = vmatpush3.msra.mxu0 %v2008_v48  ;;  %1724 = vmatprep.mubr.msk.f32.mxu0 %vm1870_vm1, %v1868_v1 }
 0x489   :  { %v646_v52 = vpop.permute.xlu1 %645  ;;  %1732 = vmatprep.subr.mxu0 %v1868_v1 }
 0x48a   :  { %1718 = vmatpush3.msra.mxu1 %v646_v52 }
 0x48b   :  { %1720 = vmatmul.mubr.msk.f32.vlgmr.msra.gmra.mrb[2].mxu1 %vm570_vm6, %v564_v50  ;;  %1727 = vmatprep.subr.mxu1 %v1868_v1  ;;  %v1063_v50 = vld [vmem:[%s2154_s7] sm:$0xf] }
 0x48c   :  { %1728 = vmatpush3.msra.mxu1 %v2012_v49  ;;  %1729 = vmatprep.mubr.msk.f32.mxu1 %vm1870_vm1, %v1868_v1 }
 0x48d   :  { %v862_v54 = vpop.permute.xlu1 %861  ;;  %1737 = vmatprep.subr.mxu1 %v1868_v1 }
 0x48f   :  { %1725 = vmatmul.mubr.msk.f32.vlgmr.msra.gmra.mrb[2].mxu0 %vm570_vm6, %v563_v53 }
 0x490   :  { %1733 = vmatpush3.msra.mxu0 %v862_v54  ;;  %1734 = vmatprep.mubr.msk.f32.mxu0 %vm1870_vm1, %v1868_v1 }
 0x491   :  { %v938_v55 = vpop.permute.xlu1 %937  ;;  %1784 = vmatprep.subr.bf16.mxu0 %v1874_v27 }
 0x493   :  { %1730 = vmatmul.mubr.msk.f32.vlgmr.msra.gmra.mrb[2].mxu1 %vm570_vm6, %v563_v53  ;;  %v1065_v53 = vld [vmem:[%s2154_s7 + $0x8] sm:$0xf] }
 0x494   :  { %1738 = vmatpush3.msra.mxu1 %v938_v55  ;;  %1739 = vmatprep.mubr.msk.f32.mxu1 %vm1870_vm1, %v1868_v1 }
 0x495   :  { %1788 = vmatprep.subr.bf16.mxu1 %v1874_v27 }
 0x497   :  { %1735 = vmatmul.mubr.msk.f32.vlgmr.msra.gmra.mrb[2].mxu0 %vm570_vm6, %v565_v56 }
 0x498   :  { %1746 = vmatprep.mubr.msk.f32.mxu0 %vm1870_vm1, %v1868_v1 }
 0x49b   :  { %1740 = vmatmul.mubr.msk.f32.vlgmr.msra.gmra.mrb[2].mxu1 %vm570_vm6, %v565_v56 }
 0x49c   :  { %1753 = vmatprep.mubr.msk.f32.mxu1 %vm1870_vm1, %v1868_v1 }
 0x56a   :  { %v933_v57 = vpop.f32.mrb[2].mxu0 }
 0x56b   :  { %v1736_v58 = vpop.f32.mrb[3].mxu0  ;;  %v1012_v60 = vsel %vm513_vm5, %v933_v57, 0.0 }
 0x56e   :  { %v1006_v59 = vpop.f32.mrb[2].mxu1 }
 0x56f   :  { %v1013_v61 = vsel %vm513_vm5, %v1006_v59, 0.0  ;;  %v1741_v62 = vpop.f32.mrb[3].mxu1 }
 0x570   :  { %v1014_v63 = vadd.f32 %v1013_v61, %v1012_v60 }
 0x572   :  { %1015 = vadd.xlane.f32.xlu0 %v1014_v63 }
 0x5ff   :  { %v1016_v0 = vpop.xlane.xlu0 %1015 }
 0x600   :  { %v1017_v2 = vmul.f32 0.03125, %v1016_v0 }
 0x602   :  { %v1018_v3 = vsub.f32 %v933_v57, %v1017_v2  ;;  %v1019_v4 = vsub.f32 %v1006_v59, %v1017_v2 }
 0x604   :  { %v1020_v5 = vmul.f32 %v1018_v3, %v1018_v3  ;;  %v1021_v6 = vmul.f32 %v1019_v4, %v1019_v4 }
 0x606   :  { %v1022_v7 = vsel %vm513_vm5, %v1020_v5, 0.0  ;;  %v1023_v8 = vsel %vm513_vm5, %v1021_v6, 0.0  ;;  %v1561_v6 = vld [vmem:[%s2155_s9] sm:$0xf] }
 0x607   :  { %v1024_v9 = vadd.f32 %v1023_v8, %v1022_v7 }
 0x609   :  { %1025 = vadd.xlane.f32.xlu1 %v1024_v9 }
 0x61a   :  { %1042 = vperm.xlu1 %1841, %v1039_v10   ;;  %v1550_v10 = vld [vmem:[%s2156_s8] sm:$0xf] }
 0x696   :  { %v1026_v11 = vpop.xlane.xlu1 %1025 }
 0x697   :  { %v1027_v12 = vmul.f32 0.03125, %v1026_v11 }
 0x699   :  { %v1029_v13 = vadd.f32 1e-05, %v1027_v12 }
 0x69a   :  { %v1043_v20 = vpop.permute.xlu1 %1042 }
 0x69b   :  { %1864 = vrsqrt.f32 %v1029_v13 }
 0x6a5   :  { %v1865_v15 = vpop.eup %1864 }
 0x6a6   :  { %v1031_v16 = vmul.f32 %v1865_v15, %v1028_v14 }
 0x6a8   :  { %1034 = vperm.xlu0 %1840, %v1031_v16  }
 0x727   :  { %v1035_v17 = vpop.permute.xlu0 %1034 }
 0x728   :  { %v1037_v18 = vmul.f32 %v1035_v17, %v1018_v3  ;;  %v1038_v19 = vmul.f32 %v1035_v17, %v1019_v4 }
 0x72a   :  { %v1045_v21 = vadd.f32 %v1043_v20, %v1037_v18  ;;  %v1046_v22 = vadd.f32 %v1043_v20, %v1038_v19 }
 0x72c   :  { %v1048_v23 = vmax.f32 %v1046_v22, 0.0  ;;  %v1047_v24 = vmax.f32 %v1045_v21, 0.0 }
 0x72e   :  { %1053 = vrot.lane.b32.xlu1 %v1048_v23, %s1869_s15  ;;  %1051 = vrot.lane.b32.xlu0 %v1047_v24, %s1869_s15 }
 0x7a0   :  { %v1054_v25 = vpop.permute.xlu1 %1053  ;;  %v1052_v26 = vpop.permute.xlu0 %1051 }
 0x7a1   :  { %1058 = vst.msk [vmem:[#allocation2 + $0x18] sm:$0xf] %vm50_vm2, %v1054_v25  ;;  %1057 = vst.msk [vmem:[#allocation2 + $0x8] sm:$0xf] %vm50_vm2, %v1052_v26 }
 0x7a8   :  { %v1062_v28 = vld [vmem:[#allocation2 + $0x18] sm:$0xf]  ;;  %v1060_v29 = vld [vmem:[#allocation2 + $0x8] sm:$0xf] }
 0x7a9   :  { %v1847_v30 = vpack.i.bf16 %v1062_v28, %v2012_v49  ;;  %v1842_v31 = vpack.i.bf16 %v1060_v29, %v2008_v48  ;;  %v1797_v42 = vpack.c.bf16 %v1062_v28, %v2012_v49  ;;  %v1793_v43 = vpack.c.bf16 %v1060_v29, %v2008_v48  ;;  %v1581_v21 = vld [vmem:[#allocation2 + $0x4] sm:$0xff]  ;;  %v1583_v22 = vld [vmem:[#allocation2 + $0x14] sm:$0xff] }
 0x7ab   :  { %1848 = vrot.lane.b32.xlu1 %v1847_v30, %s1872_s0  ;;  %1843 = vrot.lane.b32.xlu0 %v1842_v31, %s1872_s0 }
 0x7af   :  { %1858 = vrot.lane.b32.xlu1 %v1847_v30, %s1871_s18  ;;  %1853 = vrot.lane.b32.xlu0 %v1842_v31, %s1871_s18 }
 0x81d   :  { %v1849_v32 = vpop.permute.xlu1 %1848  ;;  %v1844_v33 = vpop.permute.xlu0 %1843 }
 0x81e   :  { %v1851_v34 = vunpack.i.h.bf16 %v1849_v32  ;;  %v1850_v35 = vunpack.i.l.bf16 %v1849_v32  ;;  %v1846_v36 = vunpack.i.h.bf16 %v1844_v33  ;;  %v1845_v37 = vunpack.i.l.bf16 %v1844_v33 }
 0x820   :  { %v1789_v39 = vpack.c.bf16 %v1851_v34, %v1850_v35  ;;  %v1785_v40 = vpack.c.bf16 %v1846_v36, %v1845_v37 }
 0x821   :  { %v1859_v44 = vpop.permute.xlu1 %1858  ;;  %v1854_v45 = vpop.permute.xlu0 %1853 }
 0x822   :  { %1787 = vmatpush3.bf16.msk.msra.mxu0 %vm2074_vm8, %v1785_v40  ;;  %1791 = vmatpush3.bf16.msk.msra.mxu1 %vm2074_vm8, %v1789_v39  ;;  %v1861_v46 = vunpack.i.h.bf16 %v1859_v44  ;;  %v1860_v47 = vunpack.i.l.bf16 %v1859_v44  ;;  %v1856_v48 = vunpack.i.h.bf16 %v1854_v45  ;;  %v1855_v49 = vunpack.i.l.bf16 %v1854_v45 }
 0x823   :  { %1792 = vmatprep.subr.bf16.mxu0 %v1874_v27  ;;  %1796 = vmatprep.subr.bf16.mxu1 %v1874_v27 }
 0x824   :  { %v1805_v51 = vpack.c.bf16 %v1861_v46, %v1860_v47  ;;  %v1801_v52 = vpack.c.bf16 %v1856_v48, %v1855_v49 }
 0x825   :  { %1747 = vmatmul.mubr.msk.f32.vlgmr.msra.gmra.mrb[4].mxu0 %vm1073_vm9, %v1064_v41  ;;  %1754 = vmatmul.mubr.msk.f32.vlgmr.msra.gmra.mrb[4].mxu1 %vm1073_vm9, %v1064_v41 }
 0x826   :  { %1795 = vmatpush3.bf16.msk.msra.mxu0 %vm2074_vm8, %v1793_v43  ;;  %1799 = vmatpush3.bf16.msk.msra.mxu1 %vm2074_vm8, %v1797_v42 }
 0x827   :  { %1760 = vmatprep.mubr.msk.f32.mxu0 %vm1870_vm1, %v1868_v1  ;;  %1767 = vmatprep.mubr.msk.f32.mxu1 %vm1870_vm1, %v1868_v1 }
 0x828   :  { %1800 = vmatprep.subr.bf16.mxu0 %v1874_v27  ;;  %1804 = vmatprep.subr.bf16.mxu1 %v1874_v27 }
 0x82d   :  { %1761 = vmatmul.mubr.msk.f32.vlgmr.msra.gmra.mrb[4].mxu0 %vm1073_vm9, %v1063_v50  ;;  %1768 = vmatmul.mubr.msk.f32.vlgmr.msra.gmra.mrb[4].mxu1 %vm1073_vm9, %v1063_v50 }
 0x82e   :  { %1803 = vmatpush3.bf16.msk.msra.mxu0 %vm2074_vm8, %v1801_v52  ;;  %1807 = vmatpush3.bf16.msk.msra.mxu1 %vm2074_vm8, %v1805_v51 }
 0x82f   :  { %1774 = vmatprep.mubr.msk.f32.mxu0 %vm1870_vm1, %v1868_v1  ;;  %1781 = vmatprep.mubr.msk.f32.mxu1 %vm1870_vm1, %v1868_v1 }
 0x835   :  { %1775 = vmatmul.mubr.msk.f32.vlgmr.msra.gmra.mrb[4].mxu0 %vm1073_vm9, %v1065_v53  ;;  %1782 = vmatmul.mubr.msk.f32.vlgmr.msra.gmra.mrb[4].mxu1 %vm1073_vm9, %v1065_v53 }
 0x908   :  { %v1451_v54 = vpop.f32.mrb[4].mxu0  ;;  %v1528_v55 = vpop.f32.mrb[4].mxu1 }
 0x909   :  { %v1534_v56 = vsel %vm513_vm5, %v1451_v54, 0.0  ;;  %v1535_v57 = vsel %vm513_vm5, %v1528_v55, 0.0  ;;  %v1776_v58 = vpop.f32.mrb[5].mxu0  ;;  %v1783_v59 = vpop.f32.mrb[5].mxu1 }
 0x90a   :  { %v1536_v60 = vadd.f32 %v1535_v57, %v1534_v56 }
 0x90c   :  { %1537 = vadd.xlane.f32.xlu0 %v1536_v60 }
 0x999   :  { %v1538_v61 = vpop.xlane.xlu0 %1537 }
 0x99a   :  { %v1539_v1 = vmul.f32 0.03125, %v1538_v61 }
 0x99c   :  { %v1540_v62 = vsub.f32 %v1451_v54, %v1539_v1  ;;  %v1541_v63 = vsub.f32 %v1528_v55, %v1539_v1 }
 0x99e   :  { %v1542_v0 = vmul.f32 %v1540_v62, %v1540_v62  ;;  %v1543_v2 = vmul.f32 %v1541_v63, %v1541_v63 }
 0x9a0   :  { %v1544_v3 = vsel %vm513_vm5, %v1542_v0, 0.0  ;;  %v1545_v4 = vsel %vm513_vm5, %v1543_v2, 0.0 }
 0x9a1   :  { %v1546_v5 = vadd.f32 %v1545_v4, %v1544_v3 }
 0x9a3   :  { %1547 = vadd.xlane.f32.xlu1 %v1546_v5 }
 0x9b4   :  { %1564 = vperm.xlu1 %1841, %v1561_v6  }
 0xa30   :  { %v1548_v7 = vpop.xlane.xlu1 %1547 }
 0xa31   :  { %v1549_v8 = vmul.f32 0.03125, %v1548_v7 }
 0xa33   :  { %v1551_v9 = vadd.f32 1e-05, %v1549_v8 }
 0xa34   :  { %v1565_v16 = vpop.permute.xlu1 %1564 }
 0xa35   :  { %1866 = vrsqrt.f32 %v1551_v9 }
 0xa3f   :  { %v1867_v11 = vpop.eup %1866 }
 0xa40   :  { %v1553_v12 = vmul.f32 %v1867_v11, %v1550_v10 }
 0xa42   :  { %1556 = vperm.xlu0 %1840, %v1553_v12  }
 0xac1   :  { %v1557_v13 = vpop.permute.xlu0 %1556 }
 0xac2   :  { %v1559_v14 = vmul.f32 %v1557_v13, %v1540_v62  ;;  %v1560_v15 = vmul.f32 %v1557_v13, %v1541_v63 }
 0xac4   :  { %v1567_v17 = vadd.f32 %v1565_v16, %v1559_v14  ;;  %v1568_v18 = vadd.f32 %v1565_v16, %v1560_v15 }
 0xac6   :  { %v1570_v19 = vmax.f32 %v1568_v18, 0.0  ;;  %v1569_v20 = vmax.f32 %v1567_v17, 0.0 }
 0xac8   :  { %1575 = vrot.lane.b32.xlu1 %v1570_v19, %s1869_s15  ;;  %1573 = vrot.lane.b32.xlu0 %v1569_v20, %s1869_s15 }
 0xacc   :  { %1589 = vrot.lane.b32.xlu0 %v1581_v21, %s1872_s0 }
 0xad0   :  { %1593 = vrot.lane.b32.xlu0 %v1583_v22, %s1872_s0 }
 0xb3a   :  { %v1576_v23 = vpop.permute.xlu1 %1575  ;;  %v1574_v24 = vpop.permute.xlu0 %1573 }
 0xb3b   :  { %1580 = vst.msk [vmem:[#allocation2 + $0x1c] sm:$0xf] %vm50_vm2, %v1576_v23  ;;  %1579 = vst.msk [vmem:[#allocation2 + $0xc] sm:$0xf] %vm50_vm2, %v1574_v24 }
 0xb3e   :  { %v1590_v25 = vpop.permute.xlu0 %1589 }
 0xb3f   :  { %1602 = vst.msk [vmem:[%s2157_s10] sm:$0xff] %vm1601_vm10, %v1590_v25 }
 0xb42   :  { %v1594_v26 = vpop.permute.xlu0 %1593  ;;  %v1582_v27 = vld [vmem:[#allocation2 + $0xc] sm:$0xf]  ;;  %v1584_v28 = vld [vmem:[#allocation2 + $0x1c] sm:$0xf] }
 0xb43   :  { %1604 = vst.msk [vmem:[%s2157_s10 + $0x10] sm:$0xff] %vm1601_vm10, %v1594_v26  ;;  %1591 = vrot.lane.b32.xlu1 %v1582_v27, %s1872_s0 }
 0xb47   :  { %1595 = vrot.lane.b32.xlu1 %v1584_v28, %s1872_s0 }
 0xbb5   :  { %v1592_v29 = vpop.permute.xlu1 %1591 }
 0xbb6   :  { %1603 = vst.msk [vmem:[%s2157_s10 + $0x8] sm:$0xf] %vm513_vm5, %v1592_v29 }
 0xbb9   :  { %v1596_v30 = vpop.permute.xlu1 %1595 }
 0xbba   :  { %1605 = vst.msk [vmem:[%s2157_s10 + $0x18] sm:$0xf] %vm513_vm5, %v1596_v30 }

</bundles_post_ra>
